<compile_context>
chip_gen: v6e
topology: v6e:2x2x1
jax: 0.10.0
libtpu: 0.0.40
codegen_flags: <defaults>
</compile_context>

<pallas_src>
from functools import partial

import jax
import jax.numpy as jnp
from jax import lax
from jax.experimental import pallas as pl
from jax.experimental.pallas import tpu as pltpu


def _lstm_kernel(gx_ref, whh_ref, aff_ref, out_ref):
    """Recurrent part of the LSTM; one independent batch tile per grid point.

    gx_ref : (T, BT, 4H) f32  precomputed, prescaled input projection x@W_ih^T + b
    whh_ref: (H, 4H)     bf16 prescaled recurrent weight W_hh^T
    aff_ref: (2, 4H)     f32  row 0 = per-lane post-scale, row 1 = per-lane post-offset
    out_ref: (BT, H)     f32  final hidden state h_T for this batch tile
    """
    T = gx_ref.shape[0]
    BT, H = out_ref.shape

    # Hoisted loads: resident across the time loop.
    whh = whh_ref[...]              # (H, 4H) bf16
    aff = aff_ref[...]              # (2, 4H) f32
    scale = aff[0:1, :]             # (1, 4H)
    offset = aff[1:2, :]            # (1, 4H)

    def step(t, carry):
        h, c = carry                                                     # (BT, H) f32
        # Per-step MXU work is only the recurrent matmul (K = H).
        gates = gx_ref[t] + jnp.dot(h.astype(jnp.bfloat16), whh,
                                    preferred_element_type=jnp.float32)  # (BT, 4H)
        # Single full-width EUP pass + one VPU fma recovers [i, f, g, o]:
        # i/f/o columns were pre-scaled by 0.5, so 0.5*tanh(.) + 0.5 == sigmoid;
        # the g column keeps scale 1 / offset 0 == plain tanh.
        act = jnp.tanh(gates) * scale + offset
        i_g = act[:, 0 * H:1 * H]
        f_g = act[:, 1 * H:2 * H]
        g_g = act[:, 2 * H:3 * H]
        o_g = act[:, 3 * H:4 * H]
        # c/h recurrence stays f32 (bounded bf16 error only via the W_hh operand).
        c_new = f_g * c + i_g * g_g
        h_new = o_g * jnp.tanh(c_new)
        return h_new, c_new

    h0 = jnp.zeros((BT, H), jnp.float32)
    c0 = jnp.zeros((BT, H), jnp.float32)
    # TODO(synk): at production T switch unroll=True -> unroll=2..4 to bound code size.
    h_last, _ = lax.fori_loop(0, T, step, (h0, c0), unroll=True)
    out_ref[...] = h_last.astype(out_ref.dtype)


@partial(jax.jit, static_argnames=("batch_tile",))
def question_embedding_forward(x, w_ih, w_hh, b_ih, b_hh, *, batch_tile=8):
    """x: (B, T, D) float32 (batch_first, matching the PyTorch module).

    w_ih: (4H, D), w_hh: (4H, H), b_ih/b_hh: (4H,) -- PyTorch LSTM parameter shapes.
    Returns output[:, -1] of shape (B, H).
    """
    B, T, D = x.shape
    H4 = w_ih.shape[0]
    H = H4 // 4
    BT = batch_tile                       # grow toward 128 (v5e) / 256 (v6e/v7x) at prod batch
    Bp = ((B + BT - 1) // BT) * BT

    # Per-gate-column pre/post scaling for the single-tanh activation trick.
    # PyTorch gate order along the 4H axis: i, f, g, o.
    col = jnp.arange(H4) // H
    is_g = col == 2
    pre = jnp.where(is_g, 1.0, 0.5).astype(jnp.float32)          # folded into weights/bias
    post_scale = jnp.where(is_g, 1.0, 0.5).astype(jnp.float32)
    post_offset = jnp.where(is_g, 0.0, 0.5).astype(jnp.float32)
    aff = jnp.stack([post_scale, post_offset], axis=0)           # (2, 4H)

    # Hoisted input projection: one big matmul (bias folded in, prescaled),
    # time-major, batch padded with zeros => padded rows stay exactly 0 through
    # the whole recurrence.
    wih_s = w_ih.T.astype(jnp.float32) * pre[None, :]                        # (D, 4H)
    b_s = ((b_ih + b_hh).astype(jnp.float32) * pre)[None, None, :]           # (1, 1, 4H)
    gx = jnp.einsum("btd,dg->tbg", x.astype(jnp.float32), wih_s,
                    preferred_element_type=jnp.float32) + b_s                # (T, B, 4H)
    gx = jnp.pad(gx, ((0, 0), (0, Bp - B), (0, 0)))                          # (T, Bp, 4H)

    # Prescaled recurrent weight as a resident bf16 MXU operand.
    whh_s = (w_hh.T.astype(jnp.float32) * pre[None, :]).astype(jnp.bfloat16)  # (H, 4H)

    out = pl.pallas_call(
        _lstm_kernel,
        out_shape=jax.ShapeDtypeStruct((Bp, H), jnp.float32),
        grid=(Bp // BT,),
        in_specs=[
            pl.BlockSpec((T, BT, H4), lambda i: (0, i, 0)),
            pl.BlockSpec((H, H4), lambda i: (0, 0)),
            pl.BlockSpec((2, H4), lambda i: (0, 0)),
        ],
        out_specs=pl.BlockSpec((BT, H), lambda i: (i, 0)),
        compiler_params=pltpu.CompilerParams(
            dimension_semantics=("parallel",),
            # NOTE: at production sizes (H~512-1024, D~300-600, large B) set
            # vmem_limit_bytes explicitly, stream gates_x in bf16, and grow BT so
            # per-buffer footprint x double-buffering stays under v7x's 64 MiB.
        ),
    )(gx, whh_s, aff)
    return out[:B]


def _reference_lstm_last(x, w_ih, w_hh, b_ih, b_hh):
    """Pure-JAX f32 reference (same math as torch.nn.LSTM, zero init, batch_first)."""
    B, T, D = x.shape
    H = w_hh.shape[1]
    wih_t = w_ih.T
    whh_t = w_hh.T
    b = b_ih + b_hh

    def step(carry, x_t):
        h, c = carry
        gates = x_t @ wih_t + h @ whh_t + b
        i = jax.nn.sigmoid(gates[:, 0 * H:1 * H])
        f = jax.nn.sigmoid(gates[:, 1 * H:2 * H])
        g = jnp.tanh(gates[:, 2 * H:3 * H])
        o = jax.nn.sigmoid(gates[:, 3 * H:4 * H])
        c = f * c + i * g
        h = o * jnp.tanh(c)
        return (h, c), h

    h0 = jnp.zeros((B, H), jnp.float32)
    c0 = jnp.zeros((B, H), jnp.float32)
    (h_last, _), _ = lax.scan(step, (h0, c0), jnp.transpose(x, (1, 0, 2)))
    return h_last


if __name__ == "__main__":
    # Module config: in_dim=32, num_hid=32, nlayers=1, bidirect=False, dropout=0, rnn_type='LSTM'
    B, T, D, H = 2, 8, 32, 32

    key = jax.random.PRNGKey(0)
    kx, k1, k2, k3, k4 = jax.random.split(key, 5)

    x = jax.random.normal(kx, (B, T, D), dtype=jnp.float32)

    # Deterministic parameter init, PyTorch-style uniform(-1/sqrt(H), 1/sqrt(H))
    s = 1.0 / jnp.sqrt(jnp.float32(H))
    w_ih = jax.random.uniform(k1, (4 * H, D), jnp.float32, -s, s)
    w_hh = jax.random.uniform(k2, (4 * H, H), jnp.float32, -s, s)
    b_ih = jax.random.uniform(k3, (4 * H,), jnp.float32, -s, s)
    b_hh = jax.random.uniform(k4, (4 * H,), jnp.float32, -s, s)

    out = question_embedding_forward(x, w_ih, w_hh, b_ih, b_hh)
    out = jax.block_until_ready(out)

    ref = _reference_lstm_last(x, w_ih, w_hh, b_ih, b_hh)
    assert out.shape == (B, H)
    # bf16 recurrent-matmul operands (f32 accumulation, f32 recurrence) vs. all-f32 reference.
    assert jnp.allclose(out, ref, rtol=3e-2, atol=3e-2), "Pallas LSTM mismatch vs reference"

    # TODO(synk): bidirectional / multi-layer / dropout variants and the GRU branch
    # of the module are not exercised by the default config and are not implemented.
    print("KERNEL_OK")
</pallas_src>

<mosaic_0001>
module attributes {stable_mosaic.version = 11 : i64} {
  func.func @_lstm_kernel(%arg0: i32, %arg1: memref<8x8x128xf32, #tpu.memory_space<vmem>>, %arg2: memref<32x128xbf16, #tpu.memory_space<vmem>>, %arg3: memref<2x128xf32, #tpu.memory_space<vmem>>, %arg4: memref<8x32xf32, #tpu.memory_space<vmem>>) attributes {dimension_semantics = [#tpu.dimension_semantics<parallel>], iteration_bounds = array<i64: 1>, scalar_prefetch = 0 : i64, scratch_operands = 0 : i64, tpu.core_type = #tpu.core_type<tc>, window_params = [{transform_indices = @transform_0, window_bounds = array<i64: 8, 8, 128>}, {pipeline_mode = #tpu.pipeline_mode<synchronous>, transform_indices = @transform_1, window_bounds = array<i64: 32, 128>}, {pipeline_mode = #tpu.pipeline_mode<synchronous>, transform_indices = @transform_2, window_bounds = array<i64: 2, 128>}, {transform_indices = @transform_3, window_bounds = array<i64: 8, 32>}]} {
    %c0 = arith.constant 0 : index
    %c0_0 = arith.constant 0 : index
    %0 = vector.load %arg2[%c0, %c0_0] : memref<32x128xbf16, #tpu.memory_space<vmem>>, vector<32x128xbf16>
    %c0_1 = arith.constant 0 : index
    %c0_2 = arith.constant 0 : index
    %1 = vector.load %arg3[%c0_1, %c0_2] : memref<2x128xf32, #tpu.memory_space<vmem>>, vector<2x128xf32>
    %2 = vector.extract_strided_slice %1 {offsets = [0, 0], sizes = [1, 128], strides = [1, 1]} : vector<2x128xf32> to vector<1x128xf32>
    %3 = vector.extract_strided_slice %1 {offsets = [1, 0], sizes = [1, 128], strides = [1, 1]} : vector<2x128xf32> to vector<1x128xf32>
    %cst = arith.constant 0.000000e+00 : f32
    %4 = vector.broadcast %cst : f32 to vector<8x32xf32>
    %cst_3 = arith.constant 0.000000e+00 : f32
    %5 = vector.broadcast %cst_3 : f32 to vector<8x32xf32>
    %c0_i32 = arith.constant 0 : i32
    %6 = arith.index_cast %c0_i32 : i32 to index
    %c0_4 = arith.constant 0 : index
    %c0_5 = arith.constant 0 : index
    %7 = vector.load %arg1[%6, %c0_4, %c0_5] : memref<8x8x128xf32, #tpu.memory_space<vmem>>, vector<1x8x128xf32>
    %8 = vector.shape_cast %7 : vector<1x8x128xf32> to vector<8x128xf32>
    %9 = arith.truncf %4 : vector<8x32xf32> to vector<8x32xbf16>
    %cst_6 = arith.constant dense<0.000000e+00> : vector<8x128xf32>
    %10 = tpu.matmul %9, %0, %cst_6 {dimension_numbers = #tpu.dot_dimension_numbers<[1], [0], [0], [1], [0, 0, 1, 1], [], []>} : vector<8x32xbf16>, vector<32x128xbf16>, vector<8x128xf32> -> vector<8x128xf32>
    %11 = arith.addf %8, %10 : vector<8x128xf32>
    %12 = math.tanh %11 : vector<8x128xf32>
    %13 = vector.broadcast %2 : vector<1x128xf32> to vector<8x128xf32>
    %14 = arith.mulf %12, %13 : vector<8x128xf32>
    %15 = vector.broadcast %3 : vector<1x128xf32> to vector<8x128xf32>
    %16 = arith.addf %14, %15 : vector<8x128xf32>
    %17 = vector.extract_strided_slice %16 {offsets = [0, 0], sizes = [8, 32], strides = [1, 1]} : vector<8x128xf32> to vector<8x32xf32>
    %18 = vector.extract_strided_slice %16 {offsets = [0, 32], sizes = [8, 32], strides = [1, 1]} : vector<8x128xf32> to vector<8x32xf32>
    %19 = vector.extract_strided_slice %16 {offsets = [0, 64], sizes = [8, 32], strides = [1, 1]} : vector<8x128xf32> to vector<8x32xf32>
    %20 = vector.extract_strided_slice %16 {offsets = [0, 96], sizes = [8, 32], strides = [1, 1]} : vector<8x128xf32> to vector<8x32xf32>
    %21 = arith.mulf %18, %5 : vector<8x32xf32>
    %22 = arith.mulf %17, %19 : vector<8x32xf32>
    %23 = arith.addf %21, %22 : vector<8x32xf32>
    %24 = math.tanh %23 : vector<8x32xf32>
    %25 = arith.mulf %20, %24 : vector<8x32xf32>
    %c1_i32 = arith.constant 1 : i32
    %26 = arith.index_cast %c1_i32 : i32 to index
    %c0_7 = arith.constant 0 : index
    %c0_8 = arith.constant 0 : index
    %27 = vector.load %arg1[%26, %c0_7, %c0_8] : memref<8x8x128xf32, #tpu.memory_space<vmem>>, vector<1x8x128xf32>
    %28 = vector.shape_cast %27 : vector<1x8x128xf32> to vector<8x128xf32>
    %29 = arith.truncf %25 : vector<8x32xf32> to vector<8x32xbf16>
    %cst_9 = arith.constant dense<0.000000e+00> : vector<8x128xf32>
    %30 = tpu.matmul %29, %0, %cst_9 {dimension_numbers = #tpu.dot_dimension_numbers<[1], [0], [0], [1], [0, 0, 1, 1], [], []>} : vector<8x32xbf16>, vector<32x128xbf16>, vector<8x128xf32> -> vector<8x128xf32>
    %31 = arith.addf %28, %30 : vector<8x128xf32>
    %32 = math.tanh %31 : vector<8x128xf32>
    %33 = vector.broadcast %2 : vector<1x128xf32> to vector<8x128xf32>
    %34 = arith.mulf %32, %33 : vector<8x128xf32>
    %35 = vector.broadcast %3 : vector<1x128xf32> to vector<8x128xf32>
    %36 = arith.addf %34, %35 : vector<8x128xf32>
    %37 = vector.extract_strided_slice %36 {offsets = [0, 0], sizes = [8, 32], strides = [1, 1]} : vector<8x128xf32> to vector<8x32xf32>
    %38 = vector.extract_strided_slice %36 {offsets = [0, 32], sizes = [8, 32], strides = [1, 1]} : vector<8x128xf32> to vector<8x32xf32>
    %39 = vector.extract_strided_slice %36 {offsets = [0, 64], sizes = [8, 32], strides = [1, 1]} : vector<8x128xf32> to vector<8x32xf32>
    %40 = vector.extract_strided_slice %36 {offsets = [0, 96], sizes = [8, 32], strides = [1, 1]} : vector<8x128xf32> to vector<8x32xf32>
    %41 = arith.mulf %38, %23 : vector<8x32xf32>
    %42 = arith.mulf %37, %39 : vector<8x32xf32>
    %43 = arith.addf %41, %42 : vector<8x32xf32>
    %44 = math.tanh %43 : vector<8x32xf32>
    %45 = arith.mulf %40, %44 : vector<8x32xf32>
    %c2_i32 = arith.constant 2 : i32
    %46 = arith.index_cast %c2_i32 : i32 to index
    %c0_10 = arith.constant 0 : index
    %c0_11 = arith.constant 0 : index
    %47 = vector.load %arg1[%46, %c0_10, %c0_11] : memref<8x8x128xf32, #tpu.memory_space<vmem>>, vector<1x8x128xf32>
    %48 = vector.shape_cast %47 : vector<1x8x128xf32> to vector<8x128xf32>
    %49 = arith.truncf %45 : vector<8x32xf32> to vector<8x32xbf16>
    %cst_12 = arith.constant dense<0.000000e+00> : vector<8x128xf32>
    %50 = tpu.matmul %49, %0, %cst_12 {dimension_numbers = #tpu.dot_dimension_numbers<[1], [0], [0], [1], [0, 0, 1, 1], [], []>} : vector<8x32xbf16>, vector<32x128xbf16>, vector<8x128xf32> -> vector<8x128xf32>
    %51 = arith.addf %48, %50 : vector<8x128xf32>
    %52 = math.tanh %51 : vector<8x128xf32>
    %53 = vector.broadcast %2 : vector<1x128xf32> to vector<8x128xf32>
    %54 = arith.mulf %52, %53 : vector<8x128xf32>
    %55 = vector.broadcast %3 : vector<1x128xf32> to vector<8x128xf32>
    %56 = arith.addf %54, %55 : vector<8x128xf32>
    %57 = vector.extract_strided_slice %56 {offsets = [0, 0], sizes = [8, 32], strides = [1, 1]} : vector<8x128xf32> to vector<8x32xf32>
    %58 = vector.extract_strided_slice %56 {offsets = [0, 32], sizes = [8, 32], strides = [1, 1]} : vector<8x128xf32> to vector<8x32xf32>
    %59 = vector.extract_strided_slice %56 {offsets = [0, 64], sizes = [8, 32], strides = [1, 1]} : vector<8x128xf32> to vector<8x32xf32>
    %60 = vector.extract_strided_slice %56 {offsets = [0, 96], sizes = [8, 32], strides = [1, 1]} : vector<8x128xf32> to vector<8x32xf32>
    %61 = arith.mulf %58, %43 : vector<8x32xf32>
    %62 = arith.mulf %57, %59 : vector<8x32xf32>
    %63 = arith.addf %61, %62 : vector<8x32xf32>
    %64 = math.tanh %63 : vector<8x32xf32>
    %65 = arith.mulf %60, %64 : vector<8x32xf32>
    %c3_i32 = arith.constant 3 : i32
    %66 = arith.index_cast %c3_i32 : i32 to index
    %c0_13 = arith.constant 0 : index
    %c0_14 = arith.constant 0 : index
    %67 = vector.load %arg1[%66, %c0_13, %c0_14] : memref<8x8x128xf32, #tpu.memory_space<vmem>>, vector<1x8x128xf32>
    %68 = vector.shape_cast %67 : vector<1x8x128xf32> to vector<8x128xf32>
    %69 = arith.truncf %65 : vector<8x32xf32> to vector<8x32xbf16>
    %cst_15 = arith.constant dense<0.000000e+00> : vector<8x128xf32>
    %70 = tpu.matmul %69, %0, %cst_15 {dimension_numbers = #tpu.dot_dimension_numbers<[1], [0], [0], [1], [0, 0, 1, 1], [], []>} : vector<8x32xbf16>, vector<32x128xbf16>, vector<8x128xf32> -> vector<8x128xf32>
    %71 = arith.addf %68, %70 : vector<8x128xf32>
    %72 = math.tanh %71 : vector<8x128xf32>
    %73 = vector.broadcast %2 : vector<1x128xf32> to vector<8x128xf32>
    %74 = arith.mulf %72, %73 : vector<8x128xf32>
    %75 = vector.broadcast %3 : vector<1x128xf32> to vector<8x128xf32>
    %76 = arith.addf %74, %75 : vector<8x128xf32>
    %77 = vector.extract_strided_slice %76 {offsets = [0, 0], sizes = [8, 32], strides = [1, 1]} : vector<8x128xf32> to vector<8x32xf32>
    %78 = vector.extract_strided_slice %76 {offsets = [0, 32], sizes = [8, 32], strides = [1, 1]} : vector<8x128xf32> to vector<8x32xf32>
    %79 = vector.extract_strided_slice %76 {offsets = [0, 64], sizes = [8, 32], strides = [1, 1]} : vector<8x128xf32> to vector<8x32xf32>
    %80 = vector.extract_strided_slice %76 {offsets = [0, 96], sizes = [8, 32], strides = [1, 1]} : vector<8x128xf32> to vector<8x32xf32>
    %81 = arith.mulf %78, %63 : vector<8x32xf32>
    %82 = arith.mulf %77, %79 : vector<8x32xf32>
    %83 = arith.addf %81, %82 : vector<8x32xf32>
    %84 = math.tanh %83 : vector<8x32xf32>
    %85 = arith.mulf %80, %84 : vector<8x32xf32>
    %c4_i32 = arith.constant 4 : i32
    %86 = arith.index_cast %c4_i32 : i32 to index
    %c0_16 = arith.constant 0 : index
    %c0_17 = arith.constant 0 : index
    %87 = vector.load %arg1[%86, %c0_16, %c0_17] : memref<8x8x128xf32, #tpu.memory_space<vmem>>, vector<1x8x128xf32>
    %88 = vector.shape_cast %87 : vector<1x8x128xf32> to vector<8x128xf32>
    %89 = arith.truncf %85 : vector<8x32xf32> to vector<8x32xbf16>
    %cst_18 = arith.constant dense<0.000000e+00> : vector<8x128xf32>
    %90 = tpu.matmul %89, %0, %cst_18 {dimension_numbers = #tpu.dot_dimension_numbers<[1], [0], [0], [1], [0, 0, 1, 1], [], []>} : vector<8x32xbf16>, vector<32x128xbf16>, vector<8x128xf32> -> vector<8x128xf32>
    %91 = arith.addf %88, %90 : vector<8x128xf32>
    %92 = math.tanh %91 : vector<8x128xf32>
    %93 = vector.broadcast %2 : vector<1x128xf32> to vector<8x128xf32>
    %94 = arith.mulf %92, %93 : vector<8x128xf32>
    %95 = vector.broadcast %3 : vector<1x128xf32> to vector<8x128xf32>
    %96 = arith.addf %94, %95 : vector<8x128xf32>
    %97 = vector.extract_strided_slice %96 {offsets = [0, 0], sizes = [8, 32], strides = [1, 1]} : vector<8x128xf32> to vector<8x32xf32>
    %98 = vector.extract_strided_slice %96 {offsets = [0, 32], sizes = [8, 32], strides = [1, 1]} : vector<8x128xf32> to vector<8x32xf32>
    %99 = vector.extract_strided_slice %96 {offsets = [0, 64], sizes = [8, 32], strides = [1, 1]} : vector<8x128xf32> to vector<8x32xf32>
    %100 = vector.extract_strided_slice %96 {offsets = [0, 96], sizes = [8, 32], strides = [1, 1]} : vector<8x128xf32> to vector<8x32xf32>
    %101 = arith.mulf %98, %83 : vector<8x32xf32>
    %102 = arith.mulf %97, %99 : vector<8x32xf32>
    %103 = arith.addf %101, %102 : vector<8x32xf32>
    %104 = math.tanh %103 : vector<8x32xf32>
    %105 = arith.mulf %100, %104 : vector<8x32xf32>
    %c5_i32 = arith.constant 5 : i32
    %106 = arith.index_cast %c5_i32 : i32 to index
    %c0_19 = arith.constant 0 : index
    %c0_20 = arith.constant 0 : index
    %107 = vector.load %arg1[%106, %c0_19, %c0_20] : memref<8x8x128xf32, #tpu.memory_space<vmem>>, vector<1x8x128xf32>
    %108 = vector.shape_cast %107 : vector<1x8x128xf32> to vector<8x128xf32>
    %109 = arith.truncf %105 : vector<8x32xf32> to vector<8x32xbf16>
    %cst_21 = arith.constant dense<0.000000e+00> : vector<8x128xf32>
    %110 = tpu.matmul %109, %0, %cst_21 {dimension_numbers = #tpu.dot_dimension_numbers<[1], [0], [0], [1], [0, 0, 1, 1], [], []>} : vector<8x32xbf16>, vector<32x128xbf16>, vector<8x128xf32> -> vector<8x128xf32>
    %111 = arith.addf %108, %110 : vector<8x128xf32>
    %112 = math.tanh %111 : vector<8x128xf32>
    %113 = vector.broadcast %2 : vector<1x128xf32> to vector<8x128xf32>
    %114 = arith.mulf %112, %113 : vector<8x128xf32>
    %115 = vector.broadcast %3 : vector<1x128xf32> to vector<8x128xf32>
    %116 = arith.addf %114, %115 : vector<8x128xf32>
    %117 = vector.extract_strided_slice %116 {offsets = [0, 0], sizes = [8, 32], strides = [1, 1]} : vector<8x128xf32> to vector<8x32xf32>
    %118 = vector.extract_strided_slice %116 {offsets = [0, 32], sizes = [8, 32], strides = [1, 1]} : vector<8x128xf32> to vector<8x32xf32>
    %119 = vector.extract_strided_slice %116 {offsets = [0, 64], sizes = [8, 32], strides = [1, 1]} : vector<8x128xf32> to vector<8x32xf32>
    %120 = vector.extract_strided_slice %116 {offsets = [0, 96], sizes = [8, 32], strides = [1, 1]} : vector<8x128xf32> to vector<8x32xf32>
    %121 = arith.mulf %118, %103 : vector<8x32xf32>
    %122 = arith.mulf %117, %119 : vector<8x32xf32>
    %123 = arith.addf %121, %122 : vector<8x32xf32>
    %124 = math.tanh %123 : vector<8x32xf32>
    %125 = arith.mulf %120, %124 : vector<8x32xf32>
    %c6_i32 = arith.constant 6 : i32
    %126 = arith.index_cast %c6_i32 : i32 to index
    %c0_22 = arith.constant 0 : index
    %c0_23 = arith.constant 0 : index
    %127 = vector.load %arg1[%126, %c0_22, %c0_23] : memref<8x8x128xf32, #tpu.memory_space<vmem>>, vector<1x8x128xf32>
    %128 = vector.shape_cast %127 : vector<1x8x128xf32> to vector<8x128xf32>
    %129 = arith.truncf %125 : vector<8x32xf32> to vector<8x32xbf16>
    %cst_24 = arith.constant dense<0.000000e+00> : vector<8x128xf32>
    %130 = tpu.matmul %129, %0, %cst_24 {dimension_numbers = #tpu.dot_dimension_numbers<[1], [0], [0], [1], [0, 0, 1, 1], [], []>} : vector<8x32xbf16>, vector<32x128xbf16>, vector<8x128xf32> -> vector<8x128xf32>
    %131 = arith.addf %128, %130 : vector<8x128xf32>
    %132 = math.tanh %131 : vector<8x128xf32>
    %133 = vector.broadcast %2 : vector<1x128xf32> to vector<8x128xf32>
    %134 = arith.mulf %132, %133 : vector<8x128xf32>
    %135 = vector.broadcast %3 : vector<1x128xf32> to vector<8x128xf32>
    %136 = arith.addf %134, %135 : vector<8x128xf32>
    %137 = vector.extract_strided_slice %136 {offsets = [0, 0], sizes = [8, 32], strides = [1, 1]} : vector<8x128xf32> to vector<8x32xf32>
    %138 = vector.extract_strided_slice %136 {offsets = [0, 32], sizes = [8, 32], strides = [1, 1]} : vector<8x128xf32> to vector<8x32xf32>
    %139 = vector.extract_strided_slice %136 {offsets = [0, 64], sizes = [8, 32], strides = [1, 1]} : vector<8x128xf32> to vector<8x32xf32>
    %140 = vector.extract_strided_slice %136 {offsets = [0, 96], sizes = [8, 32], strides = [1, 1]} : vector<8x128xf32> to vector<8x32xf32>
    %141 = arith.mulf %138, %123 : vector<8x32xf32>
    %142 = arith.mulf %137, %139 : vector<8x32xf32>
    %143 = arith.addf %141, %142 : vector<8x32xf32>
    %144 = math.tanh %143 : vector<8x32xf32>
    %145 = arith.mulf %140, %144 : vector<8x32xf32>
    %c7_i32 = arith.constant 7 : i32
    %146 = arith.index_cast %c7_i32 : i32 to index
    %c0_25 = arith.constant 0 : index
    %c0_26 = arith.constant 0 : index
    %147 = vector.load %arg1[%146, %c0_25, %c0_26] : memref<8x8x128xf32, #tpu.memory_space<vmem>>, vector<1x8x128xf32>
    %148 = vector.shape_cast %147 : vector<1x8x128xf32> to vector<8x128xf32>
    %149 = arith.truncf %145 : vector<8x32xf32> to vector<8x32xbf16>
    %cst_27 = arith.constant dense<0.000000e+00> : vector<8x128xf32>
    %150 = tpu.matmul %149, %0, %cst_27 {dimension_numbers = #tpu.dot_dimension_numbers<[1], [0], [0], [1], [0, 0, 1, 1], [], []>} : vector<8x32xbf16>, vector<32x128xbf16>, vector<8x128xf32> -> vector<8x128xf32>
    %151 = arith.addf %148, %150 : vector<8x128xf32>
    %152 = math.tanh %151 : vector<8x128xf32>
    %153 = vector.broadcast %2 : vector<1x128xf32> to vector<8x128xf32>
    %154 = arith.mulf %152, %153 : vector<8x128xf32>
    %155 = vector.broadcast %3 : vector<1x128xf32> to vector<8x128xf32>
    %156 = arith.addf %154, %155 : vector<8x128xf32>
    %157 = vector.extract_strided_slice %156 {offsets = [0, 0], sizes = [8, 32], strides = [1, 1]} : vector<8x128xf32> to vector<8x32xf32>
    %158 = vector.extract_strided_slice %156 {offsets = [0, 32], sizes = [8, 32], strides = [1, 1]} : vector<8x128xf32> to vector<8x32xf32>
    %159 = vector.extract_strided_slice %156 {offsets = [0, 64], sizes = [8, 32], strides = [1, 1]} : vector<8x128xf32> to vector<8x32xf32>
    %160 = vector.extract_strided_slice %156 {offsets = [0, 96], sizes = [8, 32], strides = [1, 1]} : vector<8x128xf32> to vector<8x32xf32>
    %161 = arith.mulf %158, %143 : vector<8x32xf32>
    %162 = arith.mulf %157, %159 : vector<8x32xf32>
    %163 = arith.addf %161, %162 : vector<8x32xf32>
    %164 = math.tanh %163 : vector<8x32xf32>
    %165 = arith.mulf %160, %164 : vector<8x32xf32>
    %c8_i32 = arith.constant 8 : i32
    %c0_28 = arith.constant 0 : index
    %c0_29 = arith.constant 0 : index
    %166 = vector.load %arg4[%c0_28, %c0_29] : memref<8x32xf32, #tpu.memory_space<vmem>>, vector<8x32xf32>
    tpu.vector_store %arg4[%c0_28, %c0_29], %165 {strides = array<i32>} : memref<8x32xf32, #tpu.memory_space<vmem>>, vector<8x32xf32>,
    return
  }
  func.func @transform_0(%arg0: i32) -> (i32, i32, i32) {
    %c0_i32 = arith.constant 0 : i32
    %c0_i32_0 = arith.constant 0 : i32
    %c0_i32_1 = arith.constant 0 : i32
    return %c0_i32, %arg0, %c0_i32_0 : i32, i32, i32
  }
  func.func @transform_1(%arg0: i32) -> (i32, i32) {
    %c0_i32 = arith.constant 0 : i32
    %c0_i32_0 = arith.constant 0 : i32
    %c0_i32_1 = arith.constant 0 : i32
    return %c0_i32, %c0_i32_0 : i32, i32
  }
  func.func @transform_2(%arg0: i32) -> (i32, i32) {
    %c0_i32 = arith.constant 0 : i32
    %c0_i32_0 = arith.constant 0 : i32
    %c0_i32_1 = arith.constant 0 : i32
    return %c0_i32, %c0_i32_0 : i32, i32
  }
  func.func @transform_3(%arg0: i32) -> (i32, i32) {
    %c0_i32 = arith.constant 0 : i32
    %c0_i32_0 = arith.constant 0 : i32
    return %arg0, %c0_i32 : i32, i32
  }
}

</mosaic_0001>

<bundles_post_ra>
// kernel: question_embedding_forward.1
= control target key start
LH: loop header
LB: loop body
LE: loop exit
PB: predicated region body
PF: predicated region fallthrough
CT: control target
= control target key end

     0   :  { %v748_v0 = vmov 0.0   ;;  %vm749_vm0 = vmmov 0   ;;  %v750_v3 = vmov 0   ;;  %v79_v7 = vlaneseq  ;;  %s751_s19 = smov 64   ;;  %s752_s20 = smov 32   ;;  %s921_s1 = inlined_call_operand.vmem [shape: bf16[32,128], index: 1, kind: input, shape index: {}]   ;;  %s922_s0 = inlined_call_operand.vmem [shape: f32[8,8,128], index: 0, kind: input, shape index: {}]   ;;  %s923_s2 = inlined_call_operand.vmem [shape: f32[2,128], index: 2, kind: input, shape index: {}]   ;;  %s924_s3 = inlined_call_operand.vmem [shape: f32[8,32], index: 3, kind: output, shape index: {}]  }
   0x1   :  { %645 = vmatprep.subr.bf16.mxu0 %v748_v0  ;;  %v777_v1 = vld [vmem:[%s921_s1 + $0x8] sm:$0xff]   ;;  %649 = vmatprep.mubr.msk.bf16.mxu0 %vm749_vm0, %v748_v0  ;;  %v788_v2 = vld [vmem:[%s921_s1] sm:$0xff]   ;;  %vm33_vm1 = vcmask 261120   ;;  %v609_v49 = vld [vmem:[%s922_s0 + $0x10] sm:$0xff] }
   0x2   :  { %653 = vmatprep.subr.bf16.mxu1 %v748_v0  ;;  %657 = vmatprep.mubr.msk.bf16.mxu1 %vm749_vm0, %v748_v0  ;;  %v20_v4 = vld [vmem:[%s922_s0] sm:$0xff]  ;;  %v80_v10 = vshrl.u32 %v79_v7, 7  ;;  %v607_v30 = vld [vmem:[%s922_s0 + $0x8] sm:$0xff]  ;;  %v611_v7 = vld [vmem:[%s922_s0 + $0x18] sm:$0xff] }
   0x3   :  { %646 = vmatpush3.bf16.msra.mxu0 %v777_v1  ;;  %654 = vmatpush3.bf16.msra.mxu1 %v777_v1  ;;  %v19_v13 = vld [vmem:[%s923_s2] sm:$0x3] }
   0x4   :  { %647 = vmatprep.subr.bf16.mxu0 %v748_v0  ;;  %655 = vmatprep.subr.bf16.mxu1 %v748_v0  ;;  %v81_v12 = vsub.s32 0, %v80_v10  ;;  %v86_v14 = vsub.s32 1, %v80_v10 }
   0x6   :  { %v809_v15 = vrot.slane %v19_v13, %v81_v12  ;;  %v811_v16 = vrot.slane %v19_v13, %v86_v14 }
   0x7   :  { %648 = vmatpush3.bf16.msra.mxu0 %v788_v2  ;;  %656 = vmatpush3.bf16.msra.mxu1 %v788_v2 }
   0x8   :  { %661 = vmatprep.subr.bf16.mxu0 %v748_v0  ;;  %669 = vmatprep.subr.bf16.mxu1 %v748_v0 }
   0xa   :  { %650 = vmatmul.mubr.bf16.vlgmr.msra.gmra.mxu0 %v750_v3 }
   0xb   :  { %662 = vmatpush3.bf16.msra.mxu0 %v777_v1  ;;  %665 = vmatprep.mubr.msk.bf16.mxu0 %vm749_vm0, %v748_v0 }
   0xc   :  { %663 = vmatprep.subr.bf16.mxu0 %v748_v0 }
   0xf   :  { %664 = vmatpush3.bf16.msra.mxu0 %v788_v2 }
  0x10   :  { %677 = vmatprep.subr.bf16.mxu0 %v748_v0 }
  0xca   :  { %v71_v5 = vpop.f32.mrf.mxu0 }
  0xcb   :  { %v77_v6 = vadd.f32 %v71_v5, %v20_v4 }
  0xcc   :  { %v651_v8 = vpop.f32.mrf.mxu0 }
  0xcd   :  { %716 = vtanh.f32 %v77_v6 }
  0xce   :  { %v74_v9 = vpop.f32.mrf.mxu0 }
  0xd0   :  { %v652_v11 = vpop.f32.mrf.mxu0 }
  0xda   :  { %v717_v17 = vpop.eup %716 }
  0xdb   :  { %v83_v18 = vmul.f32 %v717_v17, %v809_v15 }
  0xdd   :  { %v88_v19 = vadd.f32 %v811_v16, %v83_v18 }
  0xdf   :  { %91 = vrot.lane.b32.xlu0 %v88_v19, %s751_s19  ;;  %v89_v22 = vmul.f32 0.0, %v88_v19 }
 0x151   :  { %v92_v20 = vpop.permute.xlu0 %91 }
 0x152   :  { %v94_v21 = vmul.f32 %v92_v20, %v88_v19 }
 0x154   :  { %96 = vrot.lane.b32.xlu0 %v94_v21, %s752_s20 }
 0x1c6   :  { %v97_v23 = vpop.permute.xlu0 %96 }
 0x1c7   :  { %v99_v24 = vadd.f32 %v97_v23, %v89_v22 }
 0x1c9   :  { %718 = vtanh.f32 %v99_v24 }
 0x1d6   :  { %v719_v25 = vpop.eup %718 }
 0x1d7   :  { %102 = vrot.lane.b32.xlu1 %v719_v25, %s751_s19 }
 0x249   :  { %v103_v26 = vpop.permute.xlu1 %102 }
 0x24a   :  { %v105_v27 = vmul.f32 %v103_v26, %v88_v19 }
 0x24c   :  { %v108_v28 = vpack.c.bf16 %v105_v27, %v105_v27 }
 0x24e   :  { %110 = vrot.lane.b32.xlu1 %v108_v28, %s752_s20  ;;  %v613_v28 = vld [vmem:[%s922_s0 + $0x20] sm:$0xff] }
 0x2c0   :  { %v111_v29 = vpop.permute.xlu1 %110 }
 0x2c1   :  { %658 = vmatmul.mubr.msk.bf16.vlgmr.msra.gmra.mxu1 %vm33_vm1, %v111_v29 }
 0x2c2   :  { %670 = vmatpush3.bf16.msra.mxu1 %v777_v1  ;;  %673 = vmatprep.mubr.msk.bf16.mxu1 %vm749_vm0, %v748_v0 }
 0x2c3   :  { %671 = vmatprep.subr.bf16.mxu1 %v748_v0 }
 0x2c6   :  { %672 = vmatpush3.bf16.msra.mxu1 %v788_v2 }
 0x2c7   :  { %685 = vmatprep.subr.bf16.mxu1 %v748_v0 }
 0x381   :  { %v149_v31 = vpop.f32.mrf.mxu1 }
 0x382   :  { %v155_v32 = vadd.f32 %v607_v30, %v149_v31 }
 0x383   :  { %v659_v33 = vpop.f32.mrf.mxu1 }
 0x384   :  { %720 = vtanh.f32 %v155_v32 }
 0x385   :  { %v152_v34 = vpop.f32.mrf.mxu1 }
 0x387   :  { %v660_v35 = vpop.f32.mrf.mxu1 }
 0x391   :  { %v721_v36 = vpop.eup %720 }
 0x392   :  { %v157_v37 = vmul.f32 %v721_v36, %v809_v15 }
 0x394   :  { %v158_v38 = vadd.f32 %v157_v37, %v811_v16 }
 0x396   :  { %161 = vrot.lane.b32.xlu0 %v158_v38, %s751_s19  ;;  %v159_v41 = vmul.f32 %v158_v38, %v99_v24 }
 0x408   :  { %v162_v39 = vpop.permute.xlu0 %161 }
 0x409   :  { %v164_v40 = vmul.f32 %v162_v39, %v158_v38 }
 0x40b   :  { %166 = vrot.lane.b32.xlu1 %v164_v40, %s752_s20 }
 0x47d   :  { %v167_v42 = vpop.permute.xlu1 %166 }
 0x47e   :  { %v169_v43 = vadd.f32 %v167_v42, %v159_v41 }
 0x480   :  { %722 = vtanh.f32 %v169_v43 }
 0x48d   :  { %v723_v44 = vpop.eup %722 }
 0x48e   :  { %172 = vrot.lane.b32.xlu0 %v723_v44, %s751_s19 }
 0x500   :  { %v173_v45 = vpop.permute.xlu0 %172 }
 0x501   :  { %v175_v46 = vmul.f32 %v173_v45, %v158_v38 }
 0x503   :  { %v178_v47 = vpack.c.bf16 %v175_v46, %v175_v46 }
 0x505   :  { %180 = vrot.lane.b32.xlu1 %v178_v47, %s752_s20  ;;  %v615_v47 = vld [vmem:[%s922_s0 + $0x28] sm:$0xff] }
 0x577   :  { %v181_v48 = vpop.permute.xlu1 %180 }
 0x578   :  { %666 = vmatmul.mubr.msk.bf16.vlgmr.msra.gmra.mxu0 %vm33_vm1, %v181_v48 }
 0x579   :  { %678 = vmatpush3.bf16.msra.mxu0 %v777_v1  ;;  %681 = vmatprep.mubr.msk.bf16.mxu0 %vm749_vm0, %v748_v0 }
 0x57a   :  { %679 = vmatprep.subr.bf16.mxu0 %v748_v0 }
 0x57d   :  { %680 = vmatpush3.bf16.msra.mxu0 %v788_v2 }
 0x57e   :  { %693 = vmatprep.subr.bf16.mxu0 %v748_v0 }
 0x638   :  { %v219_v50 = vpop.f32.mrf.mxu0 }
 0x639   :  { %v225_v51 = vadd.f32 %v609_v49, %v219_v50 }
 0x63a   :  { %v667_v52 = vpop.f32.mrf.mxu0 }
 0x63b   :  { %724 = vtanh.f32 %v225_v51 }
 0x63c   :  { %v222_v53 = vpop.f32.mrf.mxu0 }
 0x63e   :  { %v668_v54 = vpop.f32.mrf.mxu0 }
 0x648   :  { %v725_v55 = vpop.eup %724 }
 0x649   :  { %v227_v56 = vmul.f32 %v725_v55, %v809_v15 }
 0x64b   :  { %v228_v57 = vadd.f32 %v227_v56, %v811_v16 }
 0x64d   :  { %231 = vrot.lane.b32.xlu0 %v228_v57, %s751_s19  ;;  %v229_v60 = vmul.f32 %v228_v57, %v169_v43 }
 0x6bf   :  { %v232_v58 = vpop.permute.xlu0 %231 }
 0x6c0   :  { %v234_v59 = vmul.f32 %v232_v58, %v228_v57 }
 0x6c2   :  { %236 = vrot.lane.b32.xlu1 %v234_v59, %s752_s20 }
 0x734   :  { %v237_v61 = vpop.permute.xlu1 %236 }
 0x735   :  { %v239_v62 = vadd.f32 %v237_v61, %v229_v60 }
 0x737   :  { %726 = vtanh.f32 %v239_v62 }
 0x744   :  { %v727_v63 = vpop.eup %726 }
 0x745   :  { %242 = vrot.lane.b32.xlu0 %v727_v63, %s751_s19  ;;  %v617_v63 = vld [vmem:[%s922_s0 + $0x30] sm:$0xff] }
 0x7b7   :  { %v243_v3 = vpop.permute.xlu0 %242 }
 0x7b8   :  { %v245_v4 = vmul.f32 %v243_v3, %v228_v57 }
 0x7ba   :  { %v248_v5 = vpack.c.bf16 %v245_v4, %v245_v4 }
 0x7bc   :  { %250 = vrot.lane.b32.xlu1 %v248_v5, %s752_s20 }
 0x82e   :  { %v251_v6 = vpop.permute.xlu1 %250 }
 0x82f   :  { %674 = vmatmul.mubr.msk.bf16.vlgmr.msra.gmra.mxu1 %vm33_vm1, %v251_v6 }
 0x830   :  { %686 = vmatpush3.bf16.msra.mxu1 %v777_v1  ;;  %689 = vmatprep.mubr.msk.bf16.mxu1 %vm749_vm0, %v748_v0 }
 0x831   :  { %687 = vmatprep.subr.bf16.mxu1 %v748_v0 }
 0x834   :  { %688 = vmatpush3.bf16.msra.mxu1 %v788_v2 }
 0x835   :  { %701 = vmatprep.subr.bf16.mxu1 %v748_v0 }
 0x8ef   :  { %v289_v8 = vpop.f32.mrf.mxu1 }
 0x8f0   :  { %v295_v9 = vadd.f32 %v611_v7, %v289_v8 }
 0x8f1   :  { %v675_v10 = vpop.f32.mrf.mxu1 }
 0x8f2   :  { %728 = vtanh.f32 %v295_v9 }
 0x8f3   :  { %v292_v11 = vpop.f32.mrf.mxu1 }
 0x8f5   :  { %v676_v12 = vpop.f32.mrf.mxu1 }
 0x8ff   :  { %v729_v13 = vpop.eup %728 }
 0x900   :  { %v297_v14 = vmul.f32 %v729_v13, %v809_v15 }
 0x902   :  { %v298_v17 = vadd.f32 %v297_v14, %v811_v16 }
 0x904   :  { %301 = vrot.lane.b32.xlu0 %v298_v17, %s751_s19  ;;  %v299_v20 = vmul.f32 %v298_v17, %v239_v62 }
 0x976   :  { %v302_v18 = vpop.permute.xlu0 %301 }
 0x977   :  { %v304_v19 = vmul.f32 %v302_v18, %v298_v17 }
 0x979   :  { %306 = vrot.lane.b32.xlu1 %v304_v19, %s752_s20 }
 0x9eb   :  { %v307_v21 = vpop.permute.xlu1 %306 }
 0x9ec   :  { %v309_v22 = vadd.f32 %v307_v21, %v299_v20 }
 0x9ee   :  { %730 = vtanh.f32 %v309_v22 }
 0x9fb   :  { %v731_v23 = vpop.eup %730 }
 0x9fc   :  { %312 = vrot.lane.b32.xlu0 %v731_v23, %s751_s19  ;;  %v619_v23 = vld [vmem:[%s922_s0 + $0x38] sm:$0xff] }
 0xa6e   :  { %v313_v24 = vpop.permute.xlu0 %312 }
 0xa6f   :  { %v315_v25 = vmul.f32 %v313_v24, %v298_v17 }
 0xa71   :  { %v318_v26 = vpack.c.bf16 %v315_v25, %v315_v25 }
 0xa73   :  { %320 = vrot.lane.b32.xlu1 %v318_v26, %s752_s20 }
 0xae5   :  { %v321_v27 = vpop.permute.xlu1 %320 }
 0xae6   :  { %682 = vmatmul.mubr.msk.bf16.vlgmr.msra.gmra.mxu0 %vm33_vm1, %v321_v27 }
 0xae7   :  { %694 = vmatpush3.bf16.msra.mxu0 %v777_v1  ;;  %697 = vmatprep.mubr.msk.bf16.mxu0 %vm749_vm0, %v748_v0 }
 0xae8   :  { %695 = vmatprep.subr.bf16.mxu0 %v748_v0 }
 0xaeb   :  { %696 = vmatpush3.bf16.msra.mxu0 %v788_v2 }
 0xba6   :  { %v359_v29 = vpop.f32.mrf.mxu0 }
 0xba7   :  { %v365_v30 = vadd.f32 %v613_v28, %v359_v29 }
 0xba8   :  { %v683_v31 = vpop.f32.mrf.mxu0 }
 0xba9   :  { %732 = vtanh.f32 %v365_v30 }
 0xbaa   :  { %v362_v32 = vpop.f32.mrf.mxu0 }
 0xbac   :  { %v684_v33 = vpop.f32.mrf.mxu0 }
 0xbb6   :  { %v733_v34 = vpop.eup %732 }
 0xbb7   :  { %v367_v35 = vmul.f32 %v733_v34, %v809_v15 }
 0xbb9   :  { %v368_v36 = vadd.f32 %v367_v35, %v811_v16 }
 0xbbb   :  { %371 = vrot.lane.b32.xlu0 %v368_v36, %s751_s19  ;;  %v369_v39 = vmul.f32 %v368_v36, %v309_v22 }
 0xc2d   :  { %v372_v37 = vpop.permute.xlu0 %371 }
 0xc2e   :  { %v374_v38 = vmul.f32 %v372_v37, %v368_v36 }
 0xc30   :  { %376 = vrot.lane.b32.xlu1 %v374_v38, %s752_s20 }
 0xca2   :  { %v377_v40 = vpop.permute.xlu1 %376 }
 0xca3   :  { %v379_v41 = vadd.f32 %v377_v40, %v369_v39 }
 0xca5   :  { %734 = vtanh.f32 %v379_v41 }
 0xcb2   :  { %v735_v42 = vpop.eup %734 }
 0xcb3   :  { %382 = vrot.lane.b32.xlu0 %v735_v42, %s751_s19 }
 0xd25   :  { %v383_v43 = vpop.permute.xlu0 %382 }
 0xd26   :  { %v385_v44 = vmul.f32 %v383_v43, %v368_v36 }
 0xd28   :  { %v388_v45 = vpack.c.bf16 %v385_v44, %v385_v44 }
 0xd2a   :  { %390 = vrot.lane.b32.xlu1 %v388_v45, %s752_s20 }
 0xd9c   :  { %v391_v46 = vpop.permute.xlu1 %390 }
 0xd9d   :  { %690 = vmatmul.mubr.msk.bf16.vlgmr.msra.gmra.mxu1 %vm33_vm1, %v391_v46 }
 0xd9e   :  { %702 = vmatpush3.bf16.msra.mxu1 %v777_v1  ;;  %705 = vmatprep.mubr.msk.bf16.mxu1 %vm749_vm0, %v748_v0 }
 0xd9f   :  { %703 = vmatprep.subr.bf16.mxu1 %v748_v0 }
 0xda2   :  { %704 = vmatpush3.bf16.msra.mxu1 %v788_v2 }
 0xe5d   :  { %v429_v48 = vpop.f32.mrf.mxu1 }
 0xe5e   :  { %v435_v49 = vadd.f32 %v615_v47, %v429_v48 }
 0xe5f   :  { %v691_v50 = vpop.f32.mrf.mxu1 }
 0xe60   :  { %736 = vtanh.f32 %v435_v49 }
 0xe61   :  { %v432_v51 = vpop.f32.mrf.mxu1 }
 0xe63   :  { %v692_v52 = vpop.f32.mrf.mxu1 }
 0xe6d   :  { %v737_v53 = vpop.eup %736 }
 0xe6e   :  { %v437_v1 = vmul.f32 %v737_v53, %v809_v15 }
 0xe70   :  { %v438_v54 = vadd.f32 %v437_v1, %v811_v16 }
 0xe72   :  { %441 = vrot.lane.b32.xlu0 %v438_v54, %s751_s19  ;;  %v439_v2 = vmul.f32 %v438_v54, %v379_v41 }
 0xee4   :  { %v442_v0 = vpop.permute.xlu0 %441 }
 0xee5   :  { %v444_v55 = vmul.f32 %v442_v0, %v438_v54 }
 0xee7   :  { %446 = vrot.lane.b32.xlu1 %v444_v55, %s752_s20 }
 0xf59   :  { %v447_v56 = vpop.permute.xlu1 %446 }
 0xf5a   :  { %v449_v57 = vadd.f32 %v447_v56, %v439_v2 }
 0xf5c   :  { %738 = vtanh.f32 %v449_v57 }
 0xf69   :  { %v739_v58 = vpop.eup %738 }
 0xf6a   :  { %452 = vrot.lane.b32.xlu0 %v739_v58, %s751_s19 }
 0xfdc   :  { %v453_v59 = vpop.permute.xlu0 %452 }
 0xfdd   :  { %v455_v60 = vmul.f32 %v453_v59, %v438_v54 }
 0xfdf   :  { %v458_v61 = vpack.c.bf16 %v455_v60, %v455_v60 }
 0xfe1   :  { %460 = vrot.lane.b32.xlu1 %v458_v61, %s752_s20 }
0x1053   :  { %v461_v62 = vpop.permute.xlu1 %460 }
0x1054   :  { %698 = vmatmul.mubr.msk.bf16.vlgmr.msra.gmra.mxu0 %vm33_vm1, %v461_v62 }
0x1114   :  { %v499_v3 = vpop.f32.mrf.mxu0 }
0x1115   :  { %v505_v4 = vadd.f32 %v617_v63, %v499_v3 }
0x1116   :  { %v699_v5 = vpop.f32.mrf.mxu0 }
0x1117   :  { %740 = vtanh.f32 %v505_v4 }
0x1118   :  { %v502_v6 = vpop.f32.mrf.mxu0 }
0x111a   :  { %v700_v7 = vpop.f32.mrf.mxu0 }
0x1124   :  { %v741_v8 = vpop.eup %740 }
0x1125   :  { %v507_v9 = vmul.f32 %v741_v8, %v809_v15 }
0x1127   :  { %v508_v10 = vadd.f32 %v507_v9, %v811_v16 }
0x1129   :  { %511 = vrot.lane.b32.xlu0 %v508_v10, %s751_s19  ;;  %v509_v13 = vmul.f32 %v508_v10, %v449_v57 }
0x119b   :  { %v512_v11 = vpop.permute.xlu0 %511 }
0x119c   :  { %v514_v12 = vmul.f32 %v512_v11, %v508_v10 }
0x119e   :  { %516 = vrot.lane.b32.xlu1 %v514_v12, %s752_s20 }
0x1210   :  { %v517_v14 = vpop.permute.xlu1 %516 }
0x1211   :  { %v519_v17 = vadd.f32 %v517_v14, %v509_v13 }
0x1213   :  { %742 = vtanh.f32 %v519_v17 }
0x1220   :  { %v743_v18 = vpop.eup %742 }
0x1221   :  { %522 = vrot.lane.b32.xlu0 %v743_v18, %s751_s19 }
0x1293   :  { %v523_v19 = vpop.permute.xlu0 %522 }
0x1294   :  { %v525_v20 = vmul.f32 %v523_v19, %v508_v10 }
0x1296   :  { %v528_v21 = vpack.c.bf16 %v525_v20, %v525_v20 }
0x1298   :  { %530 = vrot.lane.b32.xlu1 %v528_v21, %s752_s20 }
0x130a   :  { %v531_v22 = vpop.permute.xlu1 %530 }
0x130b   :  { %706 = vmatmul.mubr.msk.bf16.vlgmr.msra.gmra.mxu1 %vm33_vm1, %v531_v22 }
0x13cb   :  { %v569_v24 = vpop.f32.mrf.mxu1 }
0x13cc   :  { %v575_v25 = vadd.f32 %v619_v23, %v569_v24 }
0x13cd   :  { %v707_v26 = vpop.f32.mrf.mxu1 }
0x13ce   :  { %744 = vtanh.f32 %v575_v25 }
0x13cf   :  { %v572_v27 = vpop.f32.mrf.mxu1 }
0x13d1   :  { %v708_v28 = vpop.f32.mrf.mxu1 }
0x13db   :  { %v745_v29 = vpop.eup %744 }
0x13dc   :  { %v577_v30 = vmul.f32 %v745_v29, %v809_v15 }
0x13de   :  { %v578_v31 = vadd.f32 %v577_v30, %v811_v16 }
0x13e0   :  { %581 = vrot.lane.b32.xlu0 %v578_v31, %s751_s19  ;;  %v579_v34 = vmul.f32 %v578_v31, %v519_v17 }
0x1452   :  { %v582_v32 = vpop.permute.xlu0 %581 }
0x1453   :  { %v584_v33 = vmul.f32 %v582_v32, %v578_v31 }
0x1455   :  { %586 = vrot.lane.b32.xlu1 %v584_v33, %s752_s20 }
0x14c7   :  { %v587_v35 = vpop.permute.xlu1 %586 }
0x14c8   :  { %v589_v36 = vadd.f32 %v587_v35, %v579_v34 }
0x14ca   :  { %746 = vtanh.f32 %v589_v36 }
0x14d7   :  { %v747_v37 = vpop.eup %746 }
0x14d8   :  { %592 = vrot.lane.b32.xlu0 %v747_v37, %s751_s19 }
0x154a   :  { %v593_v38 = vpop.permute.xlu0 %592 }
0x154b   :  { %v595_v39 = vmul.f32 %v593_v38, %v578_v31 }
0x154d   :  { %597 = vrot.lane.b32.xlu1 %v595_v39, %s752_s20 }
0x15bf   :  { %v598_v15 = vpop.permute.xlu1 %597 }
0x15c0   :  { %600 = vst.msk [vmem:[%s924_s3] sm:$0xff] %vm33_vm1, %v598_v15 }

</bundles_post_ra>
